<compile_context>
chip_gen: v7x
topology: tpu7x:2x2x1
jax: 0.10.0
libtpu: 0.0.40
codegen_flags: <defaults>
</compile_context>

<pallas_src>
import functools

import jax
import jax.numpy as jnp
from jax.experimental import pallas as pl
from jax.experimental.pallas import tpu as pltpu


def _radial_kernel(x_ref, w1_ref, b1_ref, w2_ref, b2_ref, o_ref):
    # x_ref:  (tp, pack*n_input)              lane-dense row tile (caller dtype)
    # w1_ref: (pack*n_input,  pack*n_hidden)  block-diagonal, resident, compute dtype
    # b1_ref: (1, pack*n_hidden)              f32
    # w2_ref: (pack*n_hidden, pack*n_output)  block-diagonal, resident, compute dtype
    # b2_ref: (1, pack*n_output)              f32
    # o_ref:  (tp, pack*n_output)
    x = x_ref[...].astype(w1_ref.dtype)                 # bf16 MXU operands (no-op if already)
    h = jnp.dot(x, w1_ref[...], preferred_element_type=jnp.float32)
    h = jnp.maximum(h + b1_ref[...], 0.0)               # F.relu, f32
    out = jnp.dot(h.astype(w2_ref.dtype), w2_ref[...],
                  preferred_element_type=jnp.float32)
    o_ref[...] = (out + b2_ref[...]).astype(o_ref.dtype)


def _choose_pack(n_input, n_hidden, n_output, w_itemsize):
    """Largest pack in {8,4,2,1} that (a) keeps the replicated block-diagonal
    weights within a small resident-VMEM budget and (b) gives lane-dense
    (multiple-of-128) I/O -- preferring dense output AND input lanes, then
    dense output lanes, then falling back to the budget-only choice."""
    budget = 4 * 1024 * 1024
    w_bytes = lambda p: p * p * (n_input * n_hidden + n_hidden * n_output) * w_itemsize
    cands = [p for p in (8, 4, 2, 1) if w_bytes(p) <= budget]
    if not cands:
        return 1
    for ok in (lambda p: (p * n_output) % 128 == 0 and (p * n_input) % 128 == 0,
               lambda p: (p * n_output) % 128 == 0,
               lambda p: True):
        good = [p for p in cands if ok(p)]
        if good:
            return good[0]
    return 1


@functools.partial(jax.jit, static_argnames=("tm", "compute_dtype"))
def radial_forward(rbf, weight1, bias1, weight2, bias2, *,
                   tm=32768, compute_dtype=jnp.bfloat16):
    """rbf: (i, j, k, n_input); weight1: (n_hidden, n_input);
    weight2: (n_output, n_hidden); biases 1-D.
    tm = row tile in original (logical) rows; compute_dtype = MXU operand dtype."""
    i, j, k, n_input = rbf.shape
    n_hidden = weight1.shape[0]
    n_output = weight2.shape[0]
    out_dtype = jnp.promote_types(rbf.dtype, weight1.dtype)
    c_itemsize = jnp.dtype(compute_dtype).itemsize
    M = i * j * k
    cdiv = lambda a, b: -(-a // b)

    pack = _choose_pack(n_input, n_hidden, n_output, c_itemsize)
    Kp1, Np1 = pack * n_input, pack * n_hidden
    Kp2, Np2 = pack * n_hidden, pack * n_output

    # Block-diagonal "packed" parameters: kron(I_pack, W^T).  Off-diagonal
    # zeros contribute exact-zero MACs, so results match the unpacked math.
    eye = jnp.eye(pack, dtype=compute_dtype)
    w1_big = jnp.kron(eye, weight1.T.astype(compute_dtype))          # (Kp1, Np1)
    w2_big = jnp.kron(eye, weight2.T.astype(compute_dtype))          # (Kp2, Np2)
    b1_big = jnp.tile(bias1.astype(jnp.float32), pack).reshape(1, Np1)
    b2_big = jnp.tile(bias2.astype(jnp.float32), pack).reshape(1, Np2)

    # Pad rows only up to the packing unit (pack*8 rows) -- NOT whole tiles.
    # The ragged last grid block is handled by Pallas partial-block masking.
    unit = pack * 8
    M_pad = cdiv(M, unit) * unit
    Mp = M_pad // pack                      # packed rows (multiple of 8)

    x = rbf.reshape(M, n_input)
    if M_pad != M:
        # Only hit when M % (pack*8) != 0; pad amount is < pack*8 rows.
        x = jnp.pad(x, ((0, M_pad - M), (0, 0)))
    x = x.reshape(Mp, Kp1)                  # free row-major view

    # Packed-row tile: as large as comfortably fits VMEM (cap 4096 for v7x's
    # 64 MiB part), a multiple of 8, and small enough that the 1-D parallel
    # grid has >= 2 steps whenever Mp allows it (v7x: 2 TensorCores).
    tp = max(8, (min(tm // pack, Mp) // 8) * 8)
    tp = min(tp, 4096)
    if Mp > 8 and cdiv(Mp, tp) < 2:
        tp = max(8, cdiv(cdiv(Mp, 2), 8) * 8)
    grid = (cdiv(Mp, tp),)

    cost = pl.CostEstimate(
        # Actual (block-diagonal-inflated) MXU work, not the logical FLOPs.
        flops=2 * Mp * (Kp1 * Np1 + Kp2 * Np2),
        transcendentals=0,
        bytes_accessed=int(x.size * x.dtype.itemsize
                           + Mp * Np2 * jnp.dtype(out_dtype).itemsize
                           + (w1_big.size + w2_big.size) * c_itemsize
                           + (b1_big.size + b2_big.size) * 4),
    )

    out_packed = pl.pallas_call(
        _radial_kernel,
        out_shape=jax.ShapeDtypeStruct((Mp, Np2), out_dtype),
        grid_spec=pltpu.PrefetchScalarGridSpec(
            num_scalar_prefetch=0,
            grid=grid,
            in_specs=[
                pl.BlockSpec((tp, Kp1), lambda m: (m, 0)),    # x tile
                pl.BlockSpec((Kp1, Np1), lambda m: (0, 0)),   # W1 (resident)
                pl.BlockSpec((1, Np1), lambda m: (0, 0)),     # b1
                pl.BlockSpec((Kp2, Np2), lambda m: (0, 0)),   # W2 (resident)
                pl.BlockSpec((1, Np2), lambda m: (0, 0)),     # b2
            ],
            out_specs=pl.BlockSpec((tp, Np2), lambda m: (m, 0)),
        ),
        compiler_params=pltpu.CompilerParams(
            dimension_semantics=("parallel",)),
        cost_estimate=cost,
    )(x, w1_big, b1_big, w2_big, b2_big)

    out = out_packed.reshape(M_pad, n_output)   # free (contiguous) reshape
    if M_pad != M:
        out = out[:M]                           # only when M not pack*8-aligned
    return out.reshape(i, j, k, n_output)


def _xavier_normal(key, shape):
    # torch.nn.init.xavier_normal_ for a (fan_out, fan_in) weight.
    fan_out, fan_in = shape
    std = (2.0 / (fan_in + fan_out)) ** 0.5
    return std * jax.random.normal(key, shape, dtype=jnp.float32)


def _reference(rbf, weight1, bias1, weight2, bias2):
    hidden = bias1 + jnp.einsum('ijkl,ml->ijkm', rbf, weight1)
    hidden = jnp.maximum(hidden, 0.0)
    return bias2 + jnp.einsum('ijkl,ml->ijkm', hidden, weight2)


if __name__ == "__main__":
    n_input, n_hidden, n_output = 32, 32, 16

    key = jax.random.PRNGKey(0)
    k1, k2, k3, kw1, kw2 = jax.random.split(key, 5)

    # Deterministic parameter init matching the module's __init__ defaults.
    weight1 = _xavier_normal(kw1, (n_hidden, n_input))    # (n_hidden, n_input)
    weight2 = _xavier_normal(kw2, (n_output, n_hidden))   # (n_output, n_hidden)
    bias1 = jnp.zeros((n_hidden,), dtype=jnp.float32)     # init.zeros_
    bias2 = jnp.zeros((n_output,), dtype=jnp.float32)

    # Case 1: aligned leading dims (M = 128 = pack*8*2 -> no pad, no slice).
    rbf1 = jax.random.normal(k1, (2, 4, 16, n_input), dtype=jnp.float32)
    out1 = jax.block_until_ready(radial_forward(rbf1, weight1, bias1, weight2, bias2))
    ref1 = _reference(rbf1, weight1, bias1, weight2, bias2)
    assert out1.shape == (2, 4, 16, n_output)
    assert jnp.allclose(out1, ref1, atol=5e-2, rtol=5e-2), "case1 (bf16 MXU) mismatch"

    # Case 1b: full-f32 MXU path for callers needing tight numerics.
    out1_f32 = jax.block_until_ready(
        radial_forward(rbf1, weight1, bias1, weight2, bias2, compute_dtype=jnp.float32))
    assert jnp.allclose(out1_f32, ref1, atol=1e-4, rtol=1e-4), "case1 (f32 MXU) mismatch"

    # Case 2: awkward leading dims (M = 105 -> pad to 128 rows, slice back).
    rbf2 = jax.random.normal(k2, (3, 5, 7, n_input), dtype=jnp.float32)
    out2 = jax.block_until_ready(radial_forward(rbf2, weight1, bias1, weight2, bias2))
    ref2 = _reference(rbf2, weight1, bias1, weight2, bias2)
    assert out2.shape == (3, 5, 7, n_output)
    assert jnp.allclose(out2, ref2, atol=5e-2, rtol=5e-2), "case2 (padded) mismatch"

    # Case 3: M = 192 -> Mp = 24 packed rows, tp = 16 -> ragged (masked) last
    # grid block with NO wrapper-side pad or slice.
    rbf3 = jax.random.normal(k3, (3, 4, 16, n_input), dtype=jnp.float32)
    out3 = jax.block_until_ready(radial_forward(rbf3, weight1, bias1, weight2, bias2))
    ref3 = _reference(rbf3, weight1, bias1, weight2, bias2)
    assert out3.shape == (3, 4, 16, n_output)
    assert jnp.allclose(out3, ref3, atol=5e-2, rtol=5e-2), "case3 (ragged block) mismatch"

    print("KERNEL_OK")
</pallas_src>

<mosaic_0001>
module attributes {stable_mosaic.version = 11 : i64} {
  func.func @_radial_kernel(%arg0: i32, %arg1: memref<8x256xf32, #tpu.memory_space<vmem>>, %arg2: memref<256x256xbf16, #tpu.memory_space<vmem>>, %arg3: memref<1x256xf32, #tpu.memory_space<vmem>>, %arg4: memref<256x128xbf16, #tpu.memory_space<vmem>>, %arg5: memref<1x128xf32, #tpu.memory_space<vmem>>, %arg6: memref<8x128xf32, #tpu.memory_space<vmem>>) attributes {dimension_semantics = [#tpu.dimension_semantics<parallel>], iteration_bounds = array<i64: 2>, scalar_prefetch = 0 : i64, scratch_operands = 0 : i64, tpu.core_type = #tpu.core_type<tc>, window_params = [{transform_indices = @transform_0, window_bounds = array<i64: 8, 256>}, {pipeline_mode = #tpu.pipeline_mode<synchronous>, transform_indices = @transform_1, window_bounds = array<i64: 256, 256>}, {pipeline_mode = #tpu.pipeline_mode<synchronous>, transform_indices = @transform_2, window_bounds = array<i64: 1, 256>}, {pipeline_mode = #tpu.pipeline_mode<synchronous>, transform_indices = @transform_3, window_bounds = array<i64: 256, 128>}, {pipeline_mode = #tpu.pipeline_mode<synchronous>, transform_indices = @transform_4, window_bounds = array<i64: 1, 128>}, {transform_indices = @transform_5, window_bounds = array<i64: 8, 128>}]} {
    %c0 = arith.constant 0 : index
    %c0_0 = arith.constant 0 : index
    %0 = vector.load %arg1[%c0, %c0_0] : memref<8x256xf32, #tpu.memory_space<vmem>>, vector<8x256xf32>
    %1 = arith.truncf %0 : vector<8x256xf32> to vector<8x256xbf16>
    %c0_1 = arith.constant 0 : index
    %c0_2 = arith.constant 0 : index
    %2 = vector.load %arg2[%c0_1, %c0_2] : memref<256x256xbf16, #tpu.memory_space<vmem>>, vector<256x256xbf16>
    %cst = arith.constant dense<0.000000e+00> : vector<8x256xf32>
    %3 = tpu.matmul %1, %2, %cst {dimension_numbers = #tpu.dot_dimension_numbers<[1], [0], [0], [1], [0, 0, 1, 1], [], []>} : vector<8x256xbf16>, vector<256x256xbf16>, vector<8x256xf32> -> vector<8x256xf32>
    %c0_3 = arith.constant 0 : index
    %c0_4 = arith.constant 0 : index
    %4 = vector.load %arg3[%c0_3, %c0_4] : memref<1x256xf32, #tpu.memory_space<vmem>>, vector<1x256xf32>
    %5 = vector.broadcast %4 : vector<1x256xf32> to vector<8x256xf32>
    %6 = arith.addf %3, %5 : vector<8x256xf32>
    %cst_5 = arith.constant 0.000000e+00 : f32
    %7 = vector.broadcast %cst_5 : f32 to vector<8x256xf32>
    %8 = arith.maximumf %6, %7 : vector<8x256xf32>
    %9 = arith.truncf %8 : vector<8x256xf32> to vector<8x256xbf16>
    %c0_6 = arith.constant 0 : index
    %c0_7 = arith.constant 0 : index
    %10 = vector.load %arg4[%c0_6, %c0_7] : memref<256x128xbf16, #tpu.memory_space<vmem>>, vector<256x128xbf16>
    %cst_8 = arith.constant dense<0.000000e+00> : vector<8x128xf32>
    %11 = tpu.matmul %9, %10, %cst_8 {dimension_numbers = #tpu.dot_dimension_numbers<[1], [0], [0], [1], [0, 0, 1, 1], [], []>} : vector<8x256xbf16>, vector<256x128xbf16>, vector<8x128xf32> -> vector<8x128xf32>
    %c0_9 = arith.constant 0 : index
    %c0_10 = arith.constant 0 : index
    %12 = vector.load %arg5[%c0_9, %c0_10] : memref<1x128xf32, #tpu.memory_space<vmem>>, vector<1x128xf32>
    %13 = vector.broadcast %12 : vector<1x128xf32> to vector<8x128xf32>
    %14 = arith.addf %11, %13 : vector<8x128xf32>
    %c0_11 = arith.constant 0 : index
    %c0_12 = arith.constant 0 : index
    %15 = vector.load %arg6[%c0_11, %c0_12] : memref<8x128xf32, #tpu.memory_space<vmem>>, vector<8x128xf32>
    tpu.vector_store %arg6[%c0_11, %c0_12], %14 {strides = array<i32>} : memref<8x128xf32, #tpu.memory_space<vmem>>, vector<8x128xf32>,
    return
  }
  func.func @transform_0(%arg0: i32) -> (i32, i32) {
    %c0_i32 = arith.constant 0 : i32
    %c0_i32_0 = arith.constant 0 : i32
    return %arg0, %c0_i32 : i32, i32
  }
  func.func @transform_1(%arg0: i32) -> (i32, i32) {
    %c0_i32 = arith.constant 0 : i32
    %c0_i32_0 = arith.constant 0 : i32
    %c0_i32_1 = arith.constant 0 : i32
    return %c0_i32, %c0_i32_0 : i32, i32
  }
  func.func @transform_2(%arg0: i32) -> (i32, i32) {
    %c0_i32 = arith.constant 0 : i32
    %c0_i32_0 = arith.constant 0 : i32
    %c0_i32_1 = arith.constant 0 : i32
    return %c0_i32, %c0_i32_0 : i32, i32
  }
  func.func @transform_3(%arg0: i32) -> (i32, i32) {
    %c0_i32 = arith.constant 0 : i32
    %c0_i32_0 = arith.constant 0 : i32
    %c0_i32_1 = arith.constant 0 : i32
    return %c0_i32, %c0_i32_0 : i32, i32
  }
  func.func @transform_4(%arg0: i32) -> (i32, i32) {
    %c0_i32 = arith.constant 0 : i32
    %c0_i32_0 = arith.constant 0 : i32
    %c0_i32_1 = arith.constant 0 : i32
    return %c0_i32, %c0_i32_0 : i32, i32
  }
  func.func @transform_5(%arg0: i32) -> (i32, i32) {
    %c0_i32 = arith.constant 0 : i32
    %c0_i32_0 = arith.constant 0 : i32
    return %arg0, %c0_i32 : i32, i32
  }
}

</mosaic_0001>

<bundles_post_ra>
// kernel: tile.13
= control target key start
LH: loop header
LB: loop body
LE: loop exit
PB: predicated region body
PF: predicated region fallthrough
CT: control target
= control target key end

     0   :  { %s22_s0 = inlined_call_operand.vmem [shape: f32[32], index: 0, kind: input, shape index: {}]   ;;  %s23_s1 = inlined_call_operand.vmem [shape: f32[8,32], index: 1, kind: output, shape index: {}]  }
   0x1   :  { %v4_v0 = vld [vmem:[%s22_s0] ss:$0 sm:$0xff] }
   0x2   :  { %5 = vst [vmem:[%s23_s1] sm:$0xff] %v4_v0 }

// kernel: tile.14
= control target key start
LH: loop header
LB: loop body
LE: loop exit
PB: predicated region body
PF: predicated region fallthrough
CT: control target
= control target key end

     0   :  { %s7_s6 = smov 3  ;;  %s14_s9 = smov 3  ;;  %vm4_vm0 = vcmask 261120   ;;  %vm11_vm1 = vcmask 1048320   ;;  %vm18_vm2 = vcmask 785920   ;;  %vm25_vm3 = vcmask 523520   ;;  %s76_s0 = inlined_call_operand.vmem [shape: f32[8,32], index: 0, kind: input, shape index: {}]   ;;  %s77_s1 = inlined_call_operand.vmem [shape: f32[1,256], index: 1, kind: output, shape index: {}]  }
   0x1   :  { %v38_v0 = vld [vmem:[%s76_s0 + $0x3] ss:$4 sm:%s7_s6]   ;;  %s45_s10 = smov 96   ;;  %s21_s11 = smov 3  ;;  %v39_v1 = vld [vmem:[%s76_s0 + $0x2] ss:$4 sm:%s14_s9]  }
   0x2   :  { %9 = vrot.lane.b32.xlu0 %v38_v0, %s45_s10  ;;  %v40_v2 = vld [vmem:[%s76_s0 + $0x1] ss:$4 sm:%s21_s11]   ;;  %s2_s16 = smov 3  ;;  %s46_s17 = smov 32  }
   0x3   :  { %23 = vrot.lane.b32.xlu1 %v40_v2, %s46_s17  ;;  %v3_v3 = vld [vmem:[%s76_s0] ss:$4 sm:%s2_s16]   ;;  %s47_s0 = smov 64  }
   0x4   :  { %5 = vst.msk [vmem:[#allocation0] ss:$8 sm:$0x3] %vm4_vm0, %v3_v3  }
   0x6   :  { %16 = vrot.lane.b32.xlu0 %v39_v1, %s47_s0 }
  0x74   :  { %v10_v4 = vpop.permute.xlu0 %9  }
  0x75   :  { %12 = vst.msk [vmem:[#allocation0] ss:$8 sm:$0x3] %vm11_vm1, %v10_v4   ;;  %v24_v5 = vpop.permute.xlu1 %23  }
  0x78   :  { %v17_v6 = vpop.permute.xlu0 %16  }
  0x79   :  { %19 = vst.msk [vmem:[#allocation0] ss:$8 sm:$0x3] %vm18_vm2, %v17_v6  }
  0x7a   :  { %26 = vst.msk [vmem:[#allocation0] ss:$8 sm:$0x3] %vm25_vm3, %v24_v5  }
  0x81   :  { %v30_v7 = vld [vmem:[#allocation0] sm:$0x1]  ;;  %v34_v8 = vld [vmem:[#allocation0 + $0x8] sm:$0x1] }
  0x82   :  { %32 = vst [vmem:[%s77_s1] sm:$0x1] %v30_v7  ;;  %41 = vst [vmem:[%s77_s1 + $0x1] sm:$0x1] %v34_v8 }

// kernel: tile.18
= control target key start
LH: loop header
LB: loop body
LE: loop exit
PB: predicated region body
PF: predicated region fallthrough
CT: control target
= control target key end

     0   :  { %s22_s0 = inlined_call_operand.vmem [shape: f32[16], index: 0, kind: input, shape index: {}]   ;;  %s23_s1 = inlined_call_operand.vmem [shape: f32[8,16], index: 1, kind: output, shape index: {}]  }
   0x1   :  { %v4_v0 = vld [vmem:[%s22_s0] ss:$0 sm:$0xff] }
   0x2   :  { %5 = vst [vmem:[%s23_s1] sm:$0xff] %v4_v0 }

// kernel: tile.19
= control target key start
LH: loop header
LB: loop body
LE: loop exit
PB: predicated region body
PF: predicated region fallthrough
CT: control target
= control target key end

     0   :  { %s67_s10 = smov 112   ;;  %s68_s11 = smov 80   ;;  %vm3_vm0 = vcmask 130048   ;;  %vm9_vm1 = vcmask 1048448   ;;  %vm15_vm2 = vcmask 917248   ;;  %vm21_vm3 = vcmask 786048   ;;  %s111_s0 = inlined_call_operand.vmem [shape: f32[8,16], index: 0, kind: input, shape index: {}]   ;;  %s112_s1 = inlined_call_operand.vmem [shape: f32[1,128], index: 1, kind: output, shape index: {}]  }
   0x1   :  { %v53_v0 = vld [vmem:[%s111_s0 + $0x7] sm:$0x1]   ;;  %v55_v1 = vld [vmem:[%s111_s0 + $0x5] sm:$0x1]   ;;  %v54_v2 = vld [vmem:[%s111_s0 + $0x6] sm:$0x1]  }
   0x2   :  { %7 = vrot.lane.b32.xlu0 %v53_v0, %s67_s10  ;;  %19 = vrot.lane.b32.xlu1 %v55_v1, %s68_s11  ;;  %v56_v3 = vld [vmem:[%s111_s0 + $0x4] sm:$0x1]   ;;  %v2_v4 = vld [vmem:[%s111_s0] sm:$0x1]   ;;  %s69_s18 = smov 96   ;;  %s70_s19 = smov 64  }
   0x3   :  { %4 = vst.msk [vmem:[#allocation0] sm:$0x1] %vm3_vm0, %v2_v4   ;;  %v57_v5 = vld [vmem:[%s111_s0 + $0x3] sm:$0x1]   ;;  %v58_v6 = vld [vmem:[%s111_s0 + $0x2] sm:$0x1]  }
   0x4   :  { %s71_s24 = smov 48   ;;  %s72_s25 = smov 32   ;;  %v59_v7 = vld [vmem:[%s111_s0 + $0x1] sm:$0x1]   ;;  %vm27_vm4 = vcmask 654848   ;;  %vm33_vm5 = vcmask 523648  }
   0x5   :  { %s73_s0 = smov 16   ;;  %vm39_vm6 = vcmask 392448   ;;  %vm45_vm7 = vcmask 261248  }
   0x6   :  { %13 = vrot.lane.b32.xlu0 %v54_v2, %s69_s18  ;;  %25 = vrot.lane.b32.xlu1 %v56_v3, %s70_s19 }
   0xa   :  { %31 = vrot.lane.b32.xlu0 %v57_v5, %s71_s24  ;;  %37 = vrot.lane.b32.xlu1 %v58_v6, %s72_s25 }
   0xe   :  { %43 = vrot.lane.b32.xlu0 %v59_v7, %s73_s0 }
  0x74   :  { %v8_v8 = vpop.permute.xlu0 %7   ;;  %v20_v9 = vpop.permute.xlu1 %19  }
  0x75   :  { %10 = vst.msk [vmem:[#allocation0] sm:$0x1] %vm9_vm1, %v8_v8  }
  0x78   :  { %v14_v10 = vpop.permute.xlu0 %13   ;;  %v26_v11 = vpop.permute.xlu1 %25  }
  0x79   :  { %16 = vst.msk [vmem:[#allocation0] sm:$0x1] %vm15_vm2, %v14_v10  }
  0x7a   :  { %22 = vst.msk [vmem:[#allocation0] sm:$0x1] %vm21_vm3, %v20_v9  }
  0x7b   :  { %28 = vst.msk [vmem:[#allocation0] sm:$0x1] %vm27_vm4, %v26_v11  }
  0x7c   :  { %v32_v12 = vpop.permute.xlu0 %31   ;;  %v38_v13 = vpop.permute.xlu1 %37  }
  0x7d   :  { %34 = vst.msk [vmem:[#allocation0] sm:$0x1] %vm33_vm5, %v32_v12  }
  0x7e   :  { %40 = vst.msk [vmem:[#allocation0] sm:$0x1] %vm39_vm6, %v38_v13  }
  0x80   :  { %v44_v14 = vpop.permute.xlu0 %43  }
  0x81   :  { %46 = vst.msk [vmem:[#allocation0] sm:$0x1] %vm45_vm7, %v44_v14  }
  0x88   :  { %v50_v15 = vld [vmem:[#allocation0] sm:$0x1] }
  0x89   :  { %52 = vst [vmem:[%s112_s1] sm:$0x1] %v50_v15 }

// kernel: radial_forward.1
= control target key start
LH: loop header
LB: loop body
LE: loop exit
PB: predicated region body
PF: predicated region fallthrough
CT: control target
= control target key end

     0   :  { %s898_s18 = smov 0   ;;  %s1073_s0 = inlined_call_operand.vmem [shape: f32[16,256], index: 0, kind: input, shape index: {}]   ;;  %s1074_s1 = inlined_call_operand.vmem [shape: bf16[256,256], index: 1, kind: input, shape index: {}]   ;;  %s1075_s2 = inlined_call_operand.vmem [shape: f32[1,256], index: 2, kind: input, shape index: {}]   ;;  %s1076_s3 = inlined_call_operand.vmem [shape: bf16[256,128], index: 3, kind: input, shape index: {}]   ;;  %s1077_s4 = inlined_call_operand.vmem [shape: f32[1,128], index: 4, kind: input, shape index: {}]   ;;  %s1078_s5 = inlined_call_operand.vmem [shape: f32[16,128], index: 5, kind: output, shape index: {}]  }
   0x1 LB: > { %s706_s19 = sadd.s32 4294967295, %s866_s18   ;;  %p710_p0 = scmp.ge.s32.totalorder %s866_s18, 1  ;;  %s866_s18 = sphi %s898_s18, %s15_s18  }
   0x2   : > { %p187_p1 = scmp.lt.s32.totalorder %s866_s18, 3 }
   0x4   : > { %p188_p2 = pnand %p710_p0, %p187_p1 }
   0x5   : > { %v796_v0 = vld [vmem:[%s1074_s1 + $0x4] ss:$8 sps:$4 sm:$0xff] (!%p188_p2)   ;;  %v798_v1 = vld [vmem:[%s1074_s1] ss:$8 sps:$4 sm:$0xff] (!%p188_p2)   ;;  %v799_v2 = vld [vmem:[%s1074_s1 + $0x14] ss:$8 sps:$4 sm:$0xff] (!%p188_p2)   ;;  %v262_v52 = vlaneseq (!%p188_p2) }
   0x6   : > { %191 = sbr.rel (%p188_p2) target bundleno = 508 (0x1fc), region = 40  ;;  %432 = vmatprep.subr.bf16.mxu0 (!%p188_p2), %v796_v0  ;;  %v801_v3 = vld [vmem:[%s1074_s1 + $0x10] ss:$8 sps:$4 sm:$0xff] (!%p188_p2)   ;;  %v802_v4 = vld [vmem:[%s1074_s1 + $0x24] ss:$8 sps:$4 sm:$0xff] (!%p188_p2)   ;;  %p214_p3 = scmp.lt.s32.totalorder (!%p188_p2), %s706_s19, 1 }
   0x7   : > { %433 = vmatpush1.bf16.msra.mxu0 (!%p188_p2), %v798_v1  ;;  %v804_v5 = vld [vmem:[%s1074_s1 + $0x20] ss:$8 sps:$4 sm:$0xff] (!%p188_p2)   ;;  %v805_v6 = vld [vmem:[%s1074_s1 + $0x34] ss:$8 sps:$4 sm:$0xff] (!%p188_p2)   ;;  %v807_v7 = vld [vmem:[%s1074_s1 + $0x30] ss:$8 sps:$4 sm:$0xff] (!%p188_p2)  }
   0x8   : > { %434 = vmatprep.subr.bf16.mxu0 (!%p188_p2), %v799_v2  ;;  %v808_v8 = vld [vmem:[%s1074_s1 + $0x44] ss:$8 sps:$4 sm:$0xff] (!%p188_p2)   ;;  %v810_v9 = vld [vmem:[%s1074_s1 + $0x40] ss:$8 sps:$4 sm:$0xff] (!%p188_p2)   ;;  %v811_v10 = vld [vmem:[%s1074_s1 + $0x54] ss:$8 sps:$4 sm:$0xff] (!%p188_p2)  }
   0x9   : > { %v813_v11 = vld [vmem:[%s1074_s1 + $0x50] ss:$8 sps:$4 sm:$0xff] (!%p188_p2)   ;;  %v814_v12 = vld [vmem:[%s1074_s1 + $0x64] ss:$8 sps:$4 sm:$0xff] (!%p188_p2)   ;;  %v816_v13 = vld [vmem:[%s1074_s1 + $0x60] ss:$8 sps:$4 sm:$0xff] (!%p188_p2)  }
   0xa   : > { %v817_v15 = vld [vmem:[%s1074_s1 + $0x74] ss:$8 sps:$4 sm:$0xff] (!%p188_p2)   ;;  %v844_v17 = vld [vmem:[%s1076_s3 + $0x40] sm:$0xff] (!%p188_p2)   ;;  %v846_v19 = vld [vmem:[%s1076_s3 + $0x48] sm:$0xff] (!%p188_p2)   ;;  %v263_v53 = vshrl.u32 (!%p188_p2), %v262_v52, 7 }
   0xb   : > { %435 = vmatpush1.bf16.msra.mxu0 (!%p188_p2), %v801_v3  ;;  %v845_v18 = vld [vmem:[%s1076_s3] sm:$0xff] (!%p188_p2)   ;;  %v819_v20 = vld [vmem:[%s1074_s1 + $0x70] ss:$8 sps:$4 sm:$0xff] (!%p188_p2)   ;;  %766 = vmatprep.subr.bf16.mxu1 (!%p188_p2), %v844_v17  ;;  %v847_v21 = vld [vmem:[%s1076_s3 + $0x8] sm:$0xff] (!%p188_p2)  }
   0xc   : > { %436 = vmatprep.subr.bf16.mxu0 (!%p188_p2), %v802_v4  ;;  %767 = vmatpush3.bf16.msra.mxu1 (!%p188_p2), %v845_v18  ;;  %v848_v22 = vld [vmem:[%s1076_s3 + $0x50] sm:$0xff] (!%p188_p2)   ;;  %v820_v23 = vld [vmem:[%s1074_s1 + $0x84] ss:$8 sps:$4 sm:$0xff] (!%p188_p2)   ;;  %v822_v24 = vld [vmem:[%s1074_s1 + $0x80] ss:$8 sps:$4 sm:$0xff] (!%p188_p2)   ;;  %v264_v54 = vsub.s32 (!%p188_p2), 0, %v263_v53 }
   0xd   : > { %s1080_s19 = smov (!%p214_p3, %s706_s19), 1  ;;  %768 = vmatprep.subr.bf16.mxu1 %v846_v19  ;;  %v849_v25 = vld [vmem:[%s1076_s3 + $0x10] sm:$0xff]   ;;  %v850_v26 = vld [vmem:[%s1076_s3 + $0x58] sm:$0xff]   ;;  %v826_v30 = vld [vmem:[%s1074_s1 + $0xa4] ss:$8 sps:$4 sm:$0xff]   ;;  %v268_v56 = vsub.s32 1, %v263_v53 }
   0xe   : > { %s765_s15 = sshll.u32 %s1080_s19, 4  ;;  %v823_v27 = vld [vmem:[%s1074_s1 + $0x94] ss:$8 sps:$4 sm:$0xff]   ;;  %v825_v28 = vld [vmem:[%s1074_s1 + $0x90] ss:$8 sps:$4 sm:$0xff]   ;;  %v852_v31 = vld [vmem:[%s1076_s3 + $0x60] sm:$0xff]  }
   0xf   : > { %437 = vmatpush1.bf16.msra.mxu0 %v804_v5  ;;  %s945_s22 = scalar_lea.vmem %s1073_s0, %s765_s15  ;;  %v851_v29 = vld [vmem:[%s1076_s3 + $0x18] sm:$0xff]   ;;  %v853_v32 = vld [vmem:[%s1076_s3 + $0x20] sm:$0xff]   ;;  %v854_v34 = vld [vmem:[%s1076_s3 + $0x68] sm:$0xff]   ;;  %s713_s7 = sshll.u32 %s1080_s19, 3 }
  0x10   : > { %438 = vmatprep.subr.bf16.mxu0 %v805_v6  ;;  %v225_v14 = vld [vmem:[%s945_s22 + $0x8] sm:$0xff]  ;;  %769 = vmatpush3.bf16.msra.mxu1 %v847_v21  ;;  %v829_v35 = vld [vmem:[%s1074_s1 + $0xb4] ss:$8 sps:$4 sm:$0xff]   ;;  %v831_v37 = vld [vmem:[%s1074_s1 + $0xb0] ss:$8 sps:$4 sm:$0xff]   ;;  %s222_s12 = scalar_lea.vmem %s1078_s5, %s713_s7 }
  0x11   : > { %v227_v16 = vpack.c.bf16 %v225_v14, %v225_v14  ;;  %770 = vmatprep.subr.bf16.mxu1 %v848_v22  ;;  %v828_v33 = vld [vmem:[%s1074_s1 + $0xa0] ss:$8 sps:$4 sm:$0xff]   ;;  %v832_v38 = vld [vmem:[%s1074_s1 + $0xc4] ss:$8 sps:$4 sm:$0xff]   ;;  %v835_v40 = vld [vmem:[%s1074_s1 + $0xd4] ss:$8 sps:$4 sm:$0xff]  }
  0x12   : > { %v855_v36 = vld [vmem:[%s1076_s3 + $0x28] sm:$0xff]   ;;  %v837_v41 = vld [vmem:[%s1074_s1 + $0xd0] ss:$8 sps:$4 sm:$0xff]   ;;  %v841_v44 = vld [vmem:[%s1074_s1 + $0xf4] ss:$8 sps:$4 sm:$0xff]  }
  0x13   : > { %439 = vmatpush1.bf16.msra.mxu0 %v807_v7  ;;  %464 = vmatprep.mubr.bf16.mxu0 %v227_v16  ;;  %v834_v39 = vld [vmem:[%s1074_s1 + $0xc0] ss:$8 sps:$4 sm:$0xff]   ;;  %v838_v42 = vld [vmem:[%s1074_s1 + $0xe4] ss:$8 sps:$4 sm:$0xff]   ;;  %v843_v45 = vld [vmem:[%s1074_s1 + $0xf0] ss:$8 sps:$4 sm:$0xff]  }
  0x14   : > { %440 = vmatprep.subr.bf16.mxu0 %v808_v8  ;;  %771 = vmatpush3.bf16.msra.mxu1 %v849_v25  ;;  %v840_v43 = vld [vmem:[%s1074_s1 + $0xe0] ss:$8 sps:$4 sm:$0xff]   ;;  %v856_v48 = vld [vmem:[%s1076_s3 + $0x70] sm:$0xff]   ;;  %v858_v50 = vld [vmem:[%s1076_s3 + $0x78] sm:$0xff]  }
  0x15   : > { %772 = vmatprep.subr.bf16.mxu1 %v850_v26  ;;  %v224_v46 = vld [vmem:[%s945_s22] sm:$0xff]  ;;  %v857_v49 = vld [vmem:[%s1076_s3 + $0x30] sm:$0xff]   ;;  %v859_v51 = vld [vmem:[%s1076_s3 + $0x38] sm:$0xff]  }
  0x16   : > { %v226_v47 = vpack.c.bf16 %v224_v46, %v224_v46  ;;  %v260_v55 = vld [vmem:[%s1075_s2] sm:$0x3] }
  0x17   : > { %441 = vmatpush1.bf16.msra.mxu0 %v810_v9  ;;  %v265_v57 = vrot.slane %v260_v55, %v264_v54  ;;  %v269_v58 = vrot.slane %v260_v55, %v268_v56  ;;  %v746_v6 = vld [vmem:[%s1077_s4] ss:$0 sm:$0xff] }
  0x18   : > { %442 = vmatprep.subr.bf16.mxu0 %v811_v10  ;;  %773 = vmatpush3.bf16.msra.mxu1 %v851_v29 }
  0x19   : > { %774 = vmatprep.subr.bf16.mxu1 %v852_v31 }
  0x1b   : > { %443 = vmatpush1.bf16.msra.mxu0 %v813_v11 }
  0x1c   : > { %444 = vmatprep.subr.bf16.mxu0 %v814_v12  ;;  %775 = vmatpush3.bf16.msra.mxu1 %v853_v32 }
  0x1d   : > { %776 = vmatprep.subr.bf16.mxu1 %v854_v34 }
  0x1f   : > { %445 = vmatpush1.bf16.msra.mxu0 %v816_v13 }
  0x20   : > { %446 = vmatprep.subr.bf16.mxu0 %v817_v15  ;;  %777 = vmatpush3.bf16.msra.mxu1 %v855_v36 }
  0x21   : > { %778 = vmatprep.subr.bf16.mxu1 %v856_v48 }
  0x23   : > { %447 = vmatpush1.bf16.msra.mxu0 %v819_v20 }
  0x24   : > { %448 = vmatprep.subr.bf16.mxu0 %v820_v23  ;;  %779 = vmatpush3.bf16.msra.mxu1 %v857_v49 }
  0x25   : > { %780 = vmatprep.subr.bf16.mxu1 %v858_v50 }
  0x27   : > { %449 = vmatpush1.bf16.msra.mxu0 %v822_v24 }
  0x28   : > { %450 = vmatprep.subr.bf16.mxu0 %v823_v27  ;;  %781 = vmatpush3.bf16.msra.mxu1 %v859_v51 }
  0x2b   : > { %451 = vmatpush1.bf16.msra.mxu0 %v825_v28 }
  0x2c   : > { %452 = vmatprep.subr.bf16.mxu0 %v826_v30 }
  0x2f   : > { %453 = vmatpush1.bf16.msra.mxu0 %v828_v33 }
  0x30   : > { %454 = vmatprep.subr.bf16.mxu0 %v829_v35 }
  0x33   : > { %455 = vmatpush1.bf16.msra.mxu0 %v831_v37 }
  0x34   : > { %456 = vmatprep.subr.bf16.mxu0 %v832_v38 }
  0x37   : > { %457 = vmatpush1.bf16.msra.mxu0 %v834_v39 }
  0x38   : > { %458 = vmatprep.subr.bf16.mxu0 %v835_v40 }
  0x3b   : > { %459 = vmatpush1.bf16.msra.mxu0 %v837_v41 }
  0x3c   : > { %460 = vmatprep.subr.bf16.mxu0 %v838_v42 }
  0x3f   : > { %461 = vmatpush1.bf16.msra.mxu0 %v840_v43 }
  0x40   : > { %462 = vmatprep.subr.bf16.mxu0 %v841_v44 }
  0x43   : > { %463 = vmatpush1.bf16.msra.mxu0 %v843_v45 }
  0x46   : > { %465 = vmatmul.mubr.bf16.vlgmr.msra.gmra.mrb[0].mxu0 %v226_v47 }
 0x119   : > { %v466_v59 = vpop.f32.mrb[0].mxu0 }
 0x11a   : > { %v467_v60 = vadd.f32 %v466_v59, %v265_v57  ;;  %v468_v61 = vpop.f32.mrb[1].mxu0 }
 0x11b   : > { %v469_v62 = vadd.f32 %v468_v61, %v269_v58  ;;  %v470_v63 = vpop.f32.mrb[2].mxu0 }
 0x11c   : > { %v473_v0 = vmax.f32 %v467_v60, 0.0  ;;  %v471_v1 = vpop.f32.mrb[3].mxu0 }
 0x11d   : > { %v474_v2 = vmax.f32 %v469_v62, 0.0 }
 0x11e   : > { %v475_v4 = vpack.c.bf16 %v473_v0, %v473_v0 }
 0x11f   : > { %v476_v3 = vpack.c.bf16 %v474_v2, %v474_v2 }
 0x121   : > { %644 = vmatprep.mubr.bf16.mxu1 %v476_v3 }
 0x122   : > { %645 = vmatmul.mubr.bf16.vlgmr.msra.gmra.mrb[0].mxu1 %v475_v4 }
 0x1f5   : > { %v782_v5 = vpop.f32.mrb[0].mxu1 }
 0x1f6   : > { %v783_v7 = vpop.f32.mrb[1].mxu1 }
 0x1f7   : > { %v784_v8 = vadd.f32 %v783_v7, %v782_v5  ;;  %v785_v9 = vpop.f32.mrb[2].mxu1 }
 0x1f8   : > { %v786_v10 = vpop.f32.mrb[3].mxu1 }
 0x1f9   : > { %v647_v11 = vadd.f32 %v784_v8, %v746_v6 }
 0x1fb   : > { %652 = vst [vmem:[%s222_s12] sm:$0xff] %v647_v11 }
 0x1fc PF: > { %s15_s18 = sadd.s32 1, %s866_s18  }
 0x1fd   : > { %p12_p4 = scmp.ge.s32.totalorder %s15_s18, 4  }
 0x1ff   :  { %14 = sbr.rel (!%p12_p4) target bundleno = 1 (0x1), region = 70 }

</bundles_post_ra>
